<compile_context>
chip_gen: v5e
topology: v5e:2x2
jax: 0.10.0
libtpu: 0.0.40
codegen_flags: <defaults>
</compile_context>

<pallas_src>
import functools

import jax
import jax.numpy as jnp
from jax import lax
from jax.experimental import pallas as pl
from jax.experimental.pallas import tpu as pltpu

LANE = 128      # f32 lane width
SUBLANE = 8     # f32 sublane count


def _round_up(x, m):
    return (x + m - 1) // m * m


# ----------------------------- Pallas kernel -------------------------------

def bigram_fwd_kernel(ids_ref, tbl_ref, gamma_ref, beta_ref, w_ref, b_ref,
                      out_ref, *, embed_size, seq_len, pos_row_offset):
    """Fused: two-hot gather (tok + pos) -> LayerNorm -> lm_head matmul + bias.

    ids_ref:   (BTp, 1)  int32 flattened token ids (row r = batch*T + t)
    tbl_ref:   (Rp, Ep)  bf16 stacked [token_table ; position_table] (zero-padded)
    gamma_ref: (1, Ep)   f32 LayerNorm weight (zero-padded)
    beta_ref:  (1, Ep)   f32 LayerNorm bias   (zero-padded)
    w_ref:     (Ep, Vp)  bf16 lm_head weight  (zero-padded, E x V layout)
    b_ref:     (1, Vp)   f32 lm_head bias     (zero-padded)
    out_ref:   (BTp, Vp) f32 logits (lane-dense, sliced to V outside)
    """
    BTp = ids_ref.shape[0]
    Rp = tbl_ref.shape[0]

    ids = ids_ref[...]                                            # (BTp, 1)

    # Two-hot gather: column `id` picks the token row, column
    # `pos_row_offset + (r % T)` picks the position row.  One MXU matmul
    # therefore computes tok_emb + pos_emb exactly (weights are 0/1, exact in
    # bf16; accumulation in f32).  Padding rows BT..BTp gather token 0 — they
    # are sliced off in the wrapper (would need masking if a loss were fused).
    col = lax.broadcasted_iota(jnp.int32, (BTp, Rp), 1)
    row_pos = lax.broadcasted_iota(jnp.int32, (BTp, Rp), 0) % seq_len
    hit = jnp.logical_or(col == ids, col == pos_row_offset + row_pos)
    oh = jnp.where(hit, 1.0, 0.0).astype(jnp.bfloat16)            # (BTp, Rp)
    x = jnp.dot(oh, tbl_ref[...],
                preferred_element_type=jnp.float32)               # (BTp, Ep)

    # LayerNorm over the TRUE embed_size (PyTorch eps = 1e-5, biased var).
    # Padded lanes of x are exactly zero, so plain sums are already correct;
    # padded lanes of y are neutralized by zero gamma/beta and zero w rows.
    inv_e = jnp.float32(1.0 / embed_size)
    mean = jnp.sum(x, axis=-1, keepdims=True) * inv_e
    var = jnp.sum(x * x, axis=-1, keepdims=True) * inv_e - mean * mean
    inv = lax.rsqrt(var + 1e-5)
    y = (x - mean) * inv * gamma_ref[...] + beta_ref[...]         # (BTp, Ep)

    # lm_head on the MXU: bf16 operands, f32 accumulation, lane-dense output.
    logits = jnp.dot(y.astype(jnp.bfloat16), w_ref[...],
                     preferred_element_type=jnp.float32)          # (BTp, Vp)
    out_ref[...] = logits + b_ref[...]


# ------------------------- one-time parameter prep --------------------------

def prepare_params(params, *, vocab_size, embed_size, block_size):
    """Build the padded/stacked parameter slabs ONCE (cache across calls)."""
    V, E, P = vocab_size, embed_size, block_size
    Ep = _round_up(E, LANE)
    Vp = _round_up(V, LANE)
    Vr = _round_up(V, SUBLANE)
    Pr = _round_up(P, SUBLANE)
    Rp = _round_up(Vr + Pr, 2 * SUBLANE)     # bf16 sublane packing friendly

    f32 = jnp.float32
    tbl = jnp.zeros((Rp, Ep), f32)
    tbl = tbl.at[:V, :E].set(params["tok_emb"].astype(f32))
    tbl = tbl.at[Vr:Vr + P, :E].set(params["pos_emb"].astype(f32))
    tbl = tbl.astype(jnp.bfloat16)

    gamma = jnp.zeros((1, Ep), f32).at[0, :E].set(params["ln_gamma"].astype(f32))
    beta = jnp.zeros((1, Ep), f32).at[0, :E].set(params["ln_beta"].astype(f32))
    w = (jnp.zeros((Ep, Vp), f32).at[:E, :V]
         .set(params["lm_w"].astype(f32)).astype(jnp.bfloat16))
    b = jnp.zeros((1, Vp), f32).at[0, :V].set(params["lm_b"].astype(f32))

    return {"tbl": tbl, "gamma": gamma, "beta": beta, "w": w, "b": b}


# ------------------------------ JAX wrapper ---------------------------------

def bigram_forward(idx, prepared, *, vocab_size, embed_size, block_size):
    """Forward matching BigramLanguageModel.forward(idx, targets=None)."""
    B, T = idx.shape
    V, E = vocab_size, embed_size
    assert T <= block_size, "sequence length exceeds block_size"

    BT = B * T
    BTp = _round_up(BT, SUBLANE)       # sublane-aligned row count
    Ep = _round_up(E, LANE)            # lane-dense embed width
    Vp = _round_up(V, LANE)            # lane-dense vocab width (output lanes)
    Vr = _round_up(V, SUBLANE)         # position rows start at this offset
    Rp = prepared["tbl"].shape[0]

    ids = jnp.zeros((BTp, 1), jnp.int32).at[:BT, 0].set(
        idx.reshape(BT).astype(jnp.int32))

    vmem = pl.BlockSpec(memory_space=pltpu.MemorySpace.VMEM)
    cost = pl.CostEstimate(
        flops=2 * BTp * (Rp * Ep + Ep * Vp),
        transcendentals=BTp,
        bytes_accessed=(ids.size * 4 + prepared["tbl"].size * 2
                        + prepared["gamma"].size * 4 + prepared["beta"].size * 4
                        + prepared["w"].size * 2 + prepared["b"].size * 4
                        + BTp * Vp * 4),
    )

    kernel = functools.partial(bigram_fwd_kernel, embed_size=E, seq_len=T,
                               pos_row_offset=Vr)
    logits_pad = pl.pallas_call(
        kernel,
        out_shape=jax.ShapeDtypeStruct((BTp, Vp), jnp.float32),
        in_specs=[vmem] * 6,
        out_specs=vmem,
        cost_estimate=cost,
    )(ids, prepared["tbl"], prepared["gamma"], prepared["beta"],
      prepared["w"], prepared["b"])

    logits = logits_pad[:BT, :V].reshape(B, T, V)
    loss = None  # targets=None path of the PyTorch module
    return logits, loss


# ------------------------- deterministic param init -------------------------

def init_params(key, vocab_size, embed_size, block_size):
    k_tok, k_pos, k_w, k_b = jax.random.split(key, 4)
    # nn.Embedding default init: N(0, 1)
    tok_emb = jax.random.normal(k_tok, (vocab_size, embed_size), jnp.float32)
    pos_emb = jax.random.normal(k_pos, (block_size, embed_size), jnp.float32)
    # nn.LayerNorm default: gamma=1, beta=0
    ln_gamma = jnp.ones((embed_size,), jnp.float32)
    ln_beta = jnp.zeros((embed_size,), jnp.float32)
    # nn.Linear default: U(-1/sqrt(fan_in), 1/sqrt(fan_in)); stored as (E, V)
    bound = 1.0 / jnp.sqrt(jnp.float32(embed_size))
    lm_w = jax.random.uniform(k_w, (embed_size, vocab_size), jnp.float32,
                              minval=-bound, maxval=bound)
    lm_b = jax.random.uniform(k_b, (vocab_size,), jnp.float32,
                              minval=-bound, maxval=bound)
    return {
        "tok_emb": tok_emb,
        "pos_emb": pos_emb,
        "ln_gamma": ln_gamma,
        "ln_beta": ln_beta,
        "lm_w": lm_w,
        "lm_b": lm_b,
    }


# ---------------------------------- main ------------------------------------

if __name__ == "__main__":
    # Synthetic config (the module's `text` is empty, so vocab_size is chosen
    # synthetically here).
    vocab_size = 32
    embed_size = 16
    block_size = 8
    B, T = 2, block_size

    key = jax.random.PRNGKey(0)
    k_params, k_idx = jax.random.split(key)
    params = init_params(k_params, vocab_size, embed_size, block_size)
    idx = jax.random.randint(k_idx, (B, T), 0, vocab_size, dtype=jnp.int32)

    # One-time prep (cached); per-call path only pads the int32 ids.
    prepared = prepare_params(params, vocab_size=vocab_size,
                              embed_size=embed_size, block_size=block_size)
    prepared = jax.block_until_ready(prepared)

    fwd = jax.jit(functools.partial(bigram_forward, vocab_size=vocab_size,
                                    embed_size=embed_size,
                                    block_size=block_size))
    logits, loss = fwd(idx, prepared)
    logits = jax.block_until_ready(logits)

    # Pure-JAX reference of the same math at the kernel's precision choices
    # (embedding tables stored in bf16, lm_head operands in bf16 with f32
    # accumulation; everything else f32).
    tok_tbl = params["tok_emb"].astype(jnp.bfloat16).astype(jnp.float32)
    pos_tbl = params["pos_emb"].astype(jnp.bfloat16).astype(jnp.float32)
    tok = tok_tbl[idx]                                # (B, T, E)
    pos = pos_tbl[:T][None, :, :]                     # (1, T, E)
    x = tok + pos
    mean = x.mean(-1, keepdims=True)
    var = ((x - mean) ** 2).mean(-1, keepdims=True)
    y = (x - mean) * jax.lax.rsqrt(var + 1e-5)
    y = y * params["ln_gamma"] + params["ln_beta"]
    ref = jnp.einsum("bte,ev->btv",
                     y.astype(jnp.bfloat16),
                     params["lm_w"].astype(jnp.bfloat16),
                     preferred_element_type=jnp.float32) + params["lm_b"]

    assert logits.shape == (B, T, vocab_size)
    assert loss is None
    assert jnp.allclose(logits, ref, atol=2e-2, rtol=2e-2), (
        float(jnp.max(jnp.abs(logits - ref))))

    print("KERNEL_OK")
</pallas_src>

<mosaic_0001>
module attributes {stable_mosaic.version = 11 : i64} {
  func.func @bigram_fwd_kernel(%arg0: memref<16x1xi32, #tpu.memory_space<vmem>>, %arg1: memref<48x128xbf16, #tpu.memory_space<vmem>>, %arg2: memref<1x128xf32, #tpu.memory_space<vmem>>, %arg3: memref<1x128xf32, #tpu.memory_space<vmem>>, %arg4: memref<128x128xbf16, #tpu.memory_space<vmem>>, %arg5: memref<1x128xf32, #tpu.memory_space<vmem>>, %arg6: memref<16x128xf32, #tpu.memory_space<vmem>>) attributes {dimension_semantics = [], scalar_prefetch = 0 : i64, scratch_operands = 0 : i64, tpu.core_type = #tpu.core_type<tc>} {
    %c0 = arith.constant 0 : index
    %c0_0 = arith.constant 0 : index
    %0 = vector.load %arg0[%c0, %c0_0] : memref<16x1xi32, #tpu.memory_space<vmem>>, vector<16x1xi32>
    %1 = tpu.iota {dimensions = array<i32: 1>} : vector<16x48xi32>
    %2 = tpu.iota {dimensions = array<i32: 0>} : vector<16x48xi32>
    %c8_i32 = arith.constant 8 : i32
    %c0_i32 = arith.constant 0 : i32
    %3 = arith.cmpi eq, %c8_i32, %c0_i32 : i32
    %c1_i32 = arith.constant 1 : i32
    %4 = arith.select %3, %c1_i32, %c8_i32 : i32
    %5 = vector.broadcast %4 : i32 to vector<16x48xi32>
    %6 = arith.remsi %2, %5 : vector<16x48xi32>
    %c0_i32_1 = arith.constant 0 : i32
    %7 = vector.broadcast %c0_i32_1 : i32 to vector<16x48xi32>
    %8 = arith.cmpi ne, %6, %7 : vector<16x48xi32>
    %c0_i32_2 = arith.constant 0 : i32
    %9 = vector.broadcast %c0_i32_2 : i32 to vector<16x48xi32>
    %10 = arith.cmpi slt, %6, %9 : vector<16x48xi32>
    %c0_i32_3 = arith.constant 0 : i32
    %11 = arith.cmpi slt, %4, %c0_i32_3 : i32
    %12 = vector.broadcast %11 : i1 to vector<16x48xi1>
    %13 = vector.broadcast %12 : vector<16x48xi1> to vector<16x48xi1>
    %14 = arith.xori %10, %13 : vector<16x48xi1>
    %15 = arith.andi %14, %8 : vector<16x48xi1>
    %16 = vector.broadcast %4 : i32 to vector<16x48xi32>
    %17 = arith.addi %6, %16 : vector<16x48xi32>
    %18 = arith.select %15, %17, %6 : vector<16x48xi1>, vector<16x48xi32>
    %19 = vector.broadcast %0 : vector<16x1xi32> to vector<16x48xi32>
    %20 = arith.cmpi eq, %1, %19 : vector<16x48xi32>
    %c32_i32 = arith.constant 32 : i32
    %21 = vector.broadcast %c32_i32 : i32 to vector<16x48xi32>
    %22 = arith.addi %21, %18 : vector<16x48xi32>
    %23 = arith.cmpi eq, %1, %22 : vector<16x48xi32>
    %24 = arith.ori %20, %23 : vector<16x48xi1>
    %cst = arith.constant 1.000000e+00 : f32
    %cst_4 = arith.constant 0.000000e+00 : f32
    %25 = vector.broadcast %cst : f32 to vector<16x48xf32>
    %26 = vector.broadcast %cst_4 : f32 to vector<16x48xf32>
    %27 = arith.select %24, %25, %26 : vector<16x48xi1>, vector<16x48xf32>
    %28 = arith.truncf %27 : vector<16x48xf32> to vector<16x48xbf16>
    %c0_5 = arith.constant 0 : index
    %c0_6 = arith.constant 0 : index
    %29 = vector.load %arg1[%c0_5, %c0_6] : memref<48x128xbf16, #tpu.memory_space<vmem>>, vector<48x128xbf16>
    %cst_7 = arith.constant dense<0.000000e+00> : vector<16x128xf32>
    %30 = tpu.matmul %28, %29, %cst_7 {dimension_numbers = #tpu.dot_dimension_numbers<[1], [0], [0], [1], [0, 0, 1, 1], [], []>} : vector<16x48xbf16>, vector<48x128xbf16>, vector<16x128xf32> -> vector<16x128xf32>
    %cst_8 = arith.constant dense<0.000000e+00> : vector<16xf32>
    %31 = vector.multi_reduction <add>, %30, %cst_8 [1] : vector<16x128xf32> to vector<16xf32>
    %32 = vector.shape_cast %31 : vector<16xf32> to vector<16x1xf32>
    %cst_9 = arith.constant 6.250000e-02 : f32
    %33 = vector.broadcast %cst_9 : f32 to vector<16x1xf32>
    %34 = arith.mulf %32, %33 : vector<16x1xf32>
    %35 = arith.mulf %30, %30 : vector<16x128xf32>
    %cst_10 = arith.constant dense<0.000000e+00> : vector<16xf32>
    %36 = vector.multi_reduction <add>, %35, %cst_10 [1] : vector<16x128xf32> to vector<16xf32>
    %37 = vector.shape_cast %36 : vector<16xf32> to vector<16x1xf32>
    %cst_11 = arith.constant 6.250000e-02 : f32
    %38 = vector.broadcast %cst_11 : f32 to vector<16x1xf32>
    %39 = arith.mulf %37, %38 : vector<16x1xf32>
    %40 = arith.mulf %34, %34 : vector<16x1xf32>
    %41 = arith.subf %39, %40 : vector<16x1xf32>
    %cst_12 = arith.constant 9.99999974E-6 : f32
    %42 = vector.broadcast %cst_12 : f32 to vector<16x1xf32>
    %43 = arith.addf %41, %42 : vector<16x1xf32>
    %44 = math.rsqrt %43 : vector<16x1xf32>
    %45 = vector.broadcast %34 : vector<16x1xf32> to vector<16x128xf32>
    %46 = arith.subf %30, %45 : vector<16x128xf32>
    %47 = vector.broadcast %44 : vector<16x1xf32> to vector<16x128xf32>
    %48 = arith.mulf %46, %47 : vector<16x128xf32>
    %c0_13 = arith.constant 0 : index
    %c0_14 = arith.constant 0 : index
    %49 = vector.load %arg2[%c0_13, %c0_14] : memref<1x128xf32, #tpu.memory_space<vmem>>, vector<1x128xf32>
    %50 = vector.broadcast %49 : vector<1x128xf32> to vector<16x128xf32>
    %51 = arith.mulf %48, %50 : vector<16x128xf32>
    %c0_15 = arith.constant 0 : index
    %c0_16 = arith.constant 0 : index
    %52 = vector.load %arg3[%c0_15, %c0_16] : memref<1x128xf32, #tpu.memory_space<vmem>>, vector<1x128xf32>
    %53 = vector.broadcast %52 : vector<1x128xf32> to vector<16x128xf32>
    %54 = arith.addf %51, %53 : vector<16x128xf32>
    %55 = arith.truncf %54 : vector<16x128xf32> to vector<16x128xbf16>
    %c0_17 = arith.constant 0 : index
    %c0_18 = arith.constant 0 : index
    %56 = vector.load %arg4[%c0_17, %c0_18] : memref<128x128xbf16, #tpu.memory_space<vmem>>, vector<128x128xbf16>
    %cst_19 = arith.constant dense<0.000000e+00> : vector<16x128xf32>
    %57 = tpu.matmul %55, %56, %cst_19 {dimension_numbers = #tpu.dot_dimension_numbers<[1], [0], [0], [1], [0, 0, 1, 1], [], []>} : vector<16x128xbf16>, vector<128x128xbf16>, vector<16x128xf32> -> vector<16x128xf32>
    %c0_20 = arith.constant 0 : index
    %c0_21 = arith.constant 0 : index
    %58 = vector.load %arg5[%c0_20, %c0_21] : memref<1x128xf32, #tpu.memory_space<vmem>>, vector<1x128xf32>
    %59 = vector.broadcast %58 : vector<1x128xf32> to vector<16x128xf32>
    %60 = arith.addf %57, %59 : vector<16x128xf32>
    %c0_22 = arith.constant 0 : index
    %c0_23 = arith.constant 0 : index
    %61 = vector.load %arg6[%c0_22, %c0_23] : memref<16x128xf32, #tpu.memory_space<vmem>>, vector<16x128xf32>
    tpu.vector_store %arg6[%c0_22, %c0_23], %60 {strides = array<i32>} : memref<16x128xf32, #tpu.memory_space<vmem>>, vector<16x128xf32>,
    return
  }
}

</mosaic_0001>

<bundles_post_ra>
// kernel: bigram_forward.1
= control target key start
LH: loop header
LB: loop body
LE: loop exit
PB: predicated region body
PF: predicated region fallthrough
CT: control target
= control target key end

     0   :  { %11 = vsyncpa [#allocation3], 0  ;;  %s483_s0 = inlined_call_operand.vmem [shape: s32[16,1], index: 0, kind: input, shape index: {}]   ;;  %s484_s1 = inlined_call_operand.hbm [shape: bf16[48,128], index: 1, kind: input, shape index: {}]   ;;  %s485_s2 = inlined_call_operand.vmem [shape: f32[1,128], index: 2, kind: input, shape index: {}]   ;;  %s486_s3 = inlined_call_operand.vmem [shape: f32[1,128], index: 3, kind: input, shape index: {}]   ;;  %s487_s4 = inlined_call_operand.hbm [shape: bf16[128,128], index: 4, kind: input, shape index: {}]   ;;  %s488_s5 = inlined_call_operand.vmem [shape: f32[1,128], index: 5, kind: input, shape index: {}]   ;;  %s489_s6 = inlined_call_operand.vmem [shape: f32[16,128], index: 6, kind: output, shape index: {}]  }
   0x1   :  { %s19_s23 = sshll.u32 %s484_s1, 4  ;;  %s20_s23 = int_to_ptr.hbm [resolvable:$true] %s19_s23 }
   0x2   :  { %12 = vsyncpa [#allocation5], 0  ;;  %s415_s24 = smov [#allocation2]   ;;  %s36_s28 = sshll.u32 %s487_s4, 4  ;;  %s37_s28 = int_to_ptr.hbm [resolvable:$true] %s36_s28 }
   0x3   :  { %s21_s25 = sshll.u32 %s415_s24, 4  ;;  %s416_s29 = smov 64   ;;  %s22_s25 = int_to_ptr.vmem [resolvable:$true] %s21_s25 }
   0x4   :  { %s417_s30 = smov 4   ;;  %s418_s7 = smov [#allocation4]  }
   0x5   :  { %27 = dma.hbm_to_vmem [thread:$0]  %s20_s23, 384, %s22_s25, [#allocation3], %s416_s29, %s416_s29, %s417_s30  }
   0x6   :  { %s38_s8 = sshll.u32 %s418_s7, 4  ;;  %s39_s8 = int_to_ptr.vmem [resolvable:$true] %s38_s8 }
   0x7   :  { %44 = dma.hbm_to_vmem [thread:$0]  %s37_s28, 1024, %s39_s8, [#allocation5], %s416_s29, %s416_s29, %s417_s30  }
   0x8   :  { %411 = dma.done.wait [#allocation3], 384  }
   0x9   :  { %412 = vsyncadd [#allocation3], 4294966912 }
   0xa   :  { %413 = dma.done.wait [#allocation5], 1024  }
   0xb   :  { %414 = vsyncadd [#allocation5], 4294966272  ;;  %v419_v0 = vmov 0   ;;  %v56_v1 = vld [vmem:[%s483_s0] sm:$0xff]  ;;  %v57_v2 = vld [vmem:[%s483_s0 + $0x8] sm:$0xff]  ;;  %v58_v6 = vlaneseq  ;;  %v420_v16 = vmov 0.0  }
   0xc   :  { %355 = vset.pattern.permute.xlu0 %v419_v0  ;;  %v340_v3 = vld [vmem:[#allocation2 + $0x10] sm:$0xff]  ;;  %v339_v4 = vld [vmem:[#allocation2 + $0x8] sm:$0xff]  ;;  %v338_v5 = vld [vmem:[#allocation2] sm:$0xff]  ;;  %vm128_vm6 = vcmask 392192  }
   0xd   :  { %88 = vperm.xlu0 %355, %v56_v1   ;;  %137 = vmatpush.bf16.msra.mxu0 %v340_v3  ;;  %v61_v7 = vshrl.u32 %v58_v6, 7  ;;  %v59_v12 = vand.u32 127, %v58_v6  ;;  %v348_v24 = vld [vmem:[#allocation4 + $0x38] sm:$0xff]  ;;  %v347_v25 = vld [vmem:[#allocation4 + $0x30] sm:$0xff]  ;;  %v346_v26 = vld [vmem:[#allocation4 + $0x28] sm:$0xff] }
   0xe   :  { %271 = vmatpush.bf16.msra.mxu1 %v348_v24  ;;  %v345_v27 = vld [vmem:[#allocation4 + $0x20] sm:$0xff]  ;;  %v344_v28 = vld [vmem:[#allocation4 + $0x18] sm:$0xff]  ;;  %v343_v29 = vld [vmem:[#allocation4 + $0x10] sm:$0xff] }
   0xf   :  { %v62_v8 = vadd.s32 8, %v61_v7  ;;  %v67_v9 = vand.u32 7, %v61_v7  ;;  %v342_v31 = vld [vmem:[#allocation4 + $0x8] sm:$0xff]  ;;  %v341_v36 = vld [vmem:[#allocation4] sm:$0xff] }
  0x10   :  { %v356_v60 = vld [vmem:[%s485_s2] ss:$0 sm:$0xff] }
  0x11   :  { %138 = vmatpush.bf16.msra.mxu0 %v339_v4  ;;  %v74_v10 = vand.u32 7, %v62_v8  ;;  %v95_v13 = vadd.s32 32, %v67_v9  ;;  %v358_v7 = vld [vmem:[%s488_s5] ss:$0 sm:$0xff] }
  0x12   :  { %272 = vmatpush.bf16.msra.mxu1 %v347_v25 }
  0x13   :  { %v96_v14 = vadd.s32 32, %v74_v10  ;;  %vm97_vm0 = vcmp.eq.s32.totalorder %v59_v12, %v95_v13 }
  0x15   :  { %91 = vperm.xlu0 %355, %v57_v2   ;;  %139 = vmatpush.bf16.msra.mxu0 %v338_v5  ;;  %vm98_vm2 = vcmp.eq.s32.totalorder %v59_v12, %v96_v14  ;;  %v357_v2 = vld [vmem:[%s486_s3] ss:$0 sm:$0xff] }
  0x16   :  { %273 = vmatpush.bf16.msra.mxu1 %v346_v26 }
  0x1a   :  { %274 = vmatpush.bf16.msra.mxu1 %v345_v27 }
  0x1e   :  { %275 = vmatpush.bf16.msra.mxu1 %v344_v28 }
  0x22   :  { %276 = vmatpush.bf16.msra.mxu1 %v343_v29 }
  0x26   :  { %277 = vmatpush.bf16.msra.mxu1 %v342_v31 }
  0x2a   :  { %278 = vmatpush.bf16.msra.mxu1 %v341_v36 }
  0x7f   :  { %v89_v11 = vpop.permute.xlu0 %88 }
  0x80   :  { %vm93_vm1 = vcmp.eq.s32.totalorder %v59_v12, %v89_v11 }
  0x81   :  { %vm99_vm3 = vmor %vm93_vm1, %vm97_vm0 }
  0x82   :  { %v101_v17 = vsel %vm99_vm3, 1.0, %v420_v16 }
  0x87   :  { %v92_v15 = vpop.permute.xlu0 %91 }
  0x88   :  { %vm94_vm4 = vcmp.eq.s32.totalorder %v59_v12, %v92_v15 }
  0x89   :  { %vm100_vm5 = vmor %vm94_vm4, %vm98_vm2 }
  0x8a   :  { %v102_v18 = vsel %vm100_vm5, 1.0, %v420_v16 }
  0x8b   :  { %v103_v19 = vpack.c.bf16 %v102_v18, %v101_v17 }
  0x8d   :  { %305 = vmatmul.msk.bf16.vlgmr.msra.gmra.mxu0 %vm128_vm6, %v103_v19 }
 0x10a   :  { %v141_v20 = vpop.f32.mrf.mxu0 }
 0x10b   :  { %146 = vadd.xlane.f32.xlu1 %v141_v20  ;;  %v152_v21 = vmul.f32 %v141_v20, %v141_v20 }
 0x10d   :  { %154 = vadd.xlane.f32.xlu2 %v152_v21 }
 0x112   :  { %v143_v22 = vpop.f32.mrf.mxu0 }
 0x113   :  { %148 = vadd.xlane.f32.xlu1 %v143_v22  ;;  %v153_v23 = vmul.f32 %v143_v22, %v143_v22 }
 0x115   :  { %156 = vadd.xlane.f32.xlu2 %v153_v23 }
 0x17e   :  { %v147_v30 = vpop.xlane.xlu1 %146 }
 0x17f   :  { %v150_v32 = vmul.f32 0.0625, %v147_v30 }
 0x180   :  { %v155_v33 = vpop.xlane.xlu2 %154 }
 0x181   :  { %v160_v34 = vmul.f32 %v150_v32, %v150_v32  ;;  %v158_v35 = vmul.f32 0.0625, %v155_v33  ;;  %v186_v57 = vsub.f32 %v141_v20, %v150_v32 }
 0x183   :  { %v162_v37 = vsub.f32 %v158_v35, %v160_v34 }
 0x185   :  { %v164_v38 = vadd.f32 1e-05, %v162_v37 }
 0x186   :  { %v149_v39 = vpop.xlane.xlu1 %148 }
 0x187   :  { %359 = vrsqrt.f32 %v164_v38  ;;  %v151_v40 = vmul.f32 0.0625, %v149_v39  ;;  %vm172_vm8 = vweird.f32 %v164_v38 }
 0x188   :  { %v157_v41 = vpop.xlane.xlu2 %156 }
 0x189   :  { %v161_v42 = vmul.f32 %v151_v40, %v151_v40  ;;  %v159_v43 = vmul.f32 0.0625, %v157_v41  ;;  %v187_v62 = vsub.f32 %v143_v22, %v151_v40 }
 0x18b   :  { %v163_v44 = vsub.f32 %v159_v43, %v161_v42 }
 0x18d   :  { %v360_v45 = vpop.eup %359  ;;  %v165_v46 = vadd.f32 1e-05, %v163_v44 }
 0x18e   :  { %v167_v47 = vmul.f32 %v360_v45, %v164_v38  ;;  %vm173_vm7 = vweird.f32 %v360_v45 }
 0x18f   :  { %361 = vrsqrt.f32 %v165_v46  ;;  %vm174_vm9 = vmor %vm172_vm8, %vm173_vm7  ;;  %vm182_vm11 = vweird.f32 %v165_v46 }
 0x190   :  { %v168_v48 = vmul.f32 %v360_v45, %v167_v47 }
 0x192   :  { %v169_v49 = vmul.f32 0.5, %v168_v48 }
 0x194   :  { %v170_v50 = vsub.f32 1.5, %v169_v49 }
 0x195   :  { %v362_v51 = vpop.eup %361 }
 0x196   :  { %v171_v52 = vmul.f32 %v360_v45, %v170_v50  ;;  %v177_v53 = vmul.f32 %v362_v51, %v165_v46  ;;  %vm183_vm10 = vweird.f32 %v362_v51 }
 0x197   :  { %vm184_vm12 = vmor %vm182_vm11, %vm183_vm10 }
 0x198   :  { %v178_v54 = vmul.f32 %v362_v51, %v177_v53  ;;  %v175_v56 = vsel %vm174_vm9, %v360_v45, %v171_v52 }
 0x199   :  { %v188_v59 = vmul.f32 %v186_v57, %v175_v56 }
 0x19a   :  { %v179_v55 = vmul.f32 0.5, %v178_v54 }
 0x19b   :  { %v194_v1 = vmul.f32 %v356_v60, %v188_v59 }
 0x19c   :  { %v180_v58 = vsub.f32 1.5, %v179_v55 }
 0x19d   :  { %v200_v4 = vadd.f32 %v357_v2, %v194_v1 }
 0x19e   :  { %v181_v61 = vmul.f32 %v362_v51, %v180_v58 }
 0x1a0   :  { %v185_v63 = vsel %vm184_vm12, %v362_v51, %v181_v61 }
 0x1a1   :  { %v189_v0 = vmul.f32 %v187_v62, %v185_v63 }
 0x1a3   :  { %v195_v3 = vmul.f32 %v356_v60, %v189_v0 }
 0x1a5   :  { %v201_v5 = vadd.f32 %v357_v2, %v195_v3 }
 0x1a7   :  { %v202_v6 = vpack.c.bf16 %v201_v5, %v200_v4 }
 0x1a9   :  { %279 = vmatmul.bf16.vlgmr.msra.gmra.mxu1 %v202_v6 }
 0x226   :  { %v280_v8 = vpop.f32.mrf.mxu1 }
 0x227   :  { %v281_v9 = vadd.f32 %v358_v7, %v280_v8 }
 0x229   :  { %285 = vst [vmem:[%s489_s6] sm:$0xff] %v281_v9 }
 0x22e   :  { %v282_v10 = vpop.f32.mrf.mxu1 }
 0x22f   :  { %v283_v11 = vadd.f32 %v358_v7, %v282_v10 }
 0x231   :  { %286 = vst [vmem:[%s489_s6 + $0x8] sm:$0xff] %v283_v11 }
 0x232   :  { %291 = vsyncpa [#allocation3], 1 }
 0x233   :  { %292 = vsyncpa [#allocation5], 1 }

</bundles_post_ra>
